<compile_context>
chip_gen: v5e
topology: v5e:2x2
jax: 0.10.0
libtpu: 0.0.40
codegen_flags: <defaults>
</compile_context>

<pallas_src>
import functools

import jax
import jax.numpy as jnp
from jax.experimental import pallas as pl
from jax.experimental.pallas import tpu as pltpu

_TM_MAX = 512   # row-tile cap: (1+S)*tm*D*2B per buffer stays well inside the scoped-VMEM
                # default on v5e (16 MiB) and v6e/v7x (32 MiB).  v6e could push 1024.


def _round_up(x, m):
    return (x + m - 1) // m * m


def _pad_and_tile(m):
    """(tm, m_pad) for the one level whose row count we may pad (the batch)."""
    m8 = _round_up(max(m, 8), 8)
    if m8 <= 8:
        return 8, 8
    tm = min(_TM_MAX, _round_up((m8 + 1) // 2, 8))   # grid >= 2 -> both v7x cores work
    return tm, _round_up(m8, tm)


def _choose_tm(m):
    """Largest multiple-of-8 divisor of m <= _TM_MAX, preferring grid >= 2 (v7x megacore)."""
    assert m % 8 == 0
    if m <= 8:
        return m
    limit = min(_TM_MAX, m // 2)
    limit = max(8, limit - limit % 8)
    for cand in range(limit, 7, -8):
        if m % cand == 0:
            return cand
    return 8


# ---------------------------------------------------------------------------
# Pallas kernels
# ---------------------------------------------------------------------------

def _neigh_max(x_ref):
    """Max over neighbor planes 1..S of x_ref [1+S, TM, D] — unrolled VPU maximum chain."""
    n_planes = x_ref.shape[0]
    nmax = x_ref[1]
    for s in range(2, n_planes):
        nmax = jnp.maximum(nmax, x_ref[s])
    return nmax


def _sage_layer_kernel(x_ref, ws_ref, wn_ref, b_ref, o_ref, *, relu):
    """One GraphSAGE layer on a TM-row tile.

    x_ref:  [1+S, TM, D]  bf16; plane 0 = source nodes, planes 1..S = sampled neighbors
    ws/wn:  [D, H]        bf16 weight halves acting on src / max-pooled neighbors
    b_ref:  [1, H]        f32 bias
    o_ref:  [TM, H]
    """
    nmax = _neigh_max(x_ref)
    acc = (jnp.dot(x_ref[0], ws_ref[...], preferred_element_type=jnp.float32)
           + jnp.dot(nmax, wn_ref[...], preferred_element_type=jnp.float32)
           + b_ref[...])
    if relu:
        acc = jnp.maximum(acc, 0.0)
    o_ref[...] = acc.astype(o_ref.dtype)


def _sage_top_kernel(x_ref, ws_ref, wn_ref, b_ref, w2_ref, b2_ref, o_ref):
    """Top layer: SAGE layer (no ReLU) with proj_out fused on the in-register accumulator."""
    nmax = _neigh_max(x_ref)
    h = (jnp.dot(x_ref[0], ws_ref[...], preferred_element_type=jnp.float32)
         + jnp.dot(nmax, wn_ref[...], preferred_element_type=jnp.float32)
         + b_ref[...])
    acc = jnp.dot(h.astype(w2_ref.dtype), w2_ref[...],
                  preferred_element_type=jnp.float32) + b2_ref[...]
    o_ref[...] = acc.astype(o_ref.dtype)


# ---------------------------------------------------------------------------
# Wrapper (grid / BlockSpec plumbing)
# ---------------------------------------------------------------------------

def sage_layer(x, w_src, w_ngh, b, *, relu, tm, proj=None):
    """x: [1+S, M, D] (plane 0 = src, planes 1..S = neighbors), bf16.
    Returns [M, H] bf16, or [M, O] f32 when proj=(w2, b2) is given (top layer)."""
    n_planes, M, D = x.shape
    H = w_src.shape[1]
    assert M % tm == 0 and tm % 8 == 0

    in_specs = [
        pl.BlockSpec((n_planes, tm, D), lambda i: (0, i, 0)),
        pl.BlockSpec((D, H), lambda i: (0, 0)),
        pl.BlockSpec((D, H), lambda i: (0, 0)),
        pl.BlockSpec((1, H), lambda i: (0, 0)),
    ]
    args = [x, w_src, w_ngh, b]
    if proj is None:
        kernel = functools.partial(_sage_layer_kernel, relu=relu)
        out_w, out_dtype = H, jnp.bfloat16
    else:
        w2, b2 = proj
        out_w, out_dtype = w2.shape[1], jnp.float32
        in_specs += [
            pl.BlockSpec((H, out_w), lambda i: (0, 0)),
            pl.BlockSpec((1, out_w), lambda i: (0, 0)),
        ]
        args += [w2, b2]
        kernel = _sage_top_kernel

    return pl.pallas_call(
        kernel,
        out_shape=jax.ShapeDtypeStruct((M, out_w), out_dtype),
        grid=(M // tm,),
        in_specs=in_specs,
        out_specs=pl.BlockSpec((tm, out_w), lambda i: (i, 0)),
        compiler_params=pltpu.CompilerParams(
            dimension_semantics=("parallel",)),
    )(*args)


# ---------------------------------------------------------------------------
# GraphSAGE forward: level-wise expansion, one fused pallas_call per layer.
# ---------------------------------------------------------------------------

def graphsage_forward(params, node_feats_bf16, adj, batch, *, n_layers):
    """node_feats_bf16: [N, D] bf16.  adj: [N, S] int32 fixed-fanout sampled neighbors.
    batch: [B] int32.  Returns [B, out_dim] f32."""
    S = adj.shape[1]
    B = batch.shape[0]

    # ---- top-down: per-layer node-id lists, neighbors appended sample-major ----
    tm_top, m_top = _pad_and_tile(B)
    ids = batch
    if m_top != B:
        ids = jnp.concatenate([ids, jnp.zeros((m_top - B,), ids.dtype)])  # dummy node 0
    nodes = [None] * (n_layers + 1)
    tms = [None] * (n_layers + 1)
    nodes[n_layers], tms[n_layers] = ids, tm_top
    for l in range(n_layers, 0, -1):
        # sample-major order => the lower level's [(1+S)*M, D] activations reshape for free
        # into [1+S, M, D] (plane 0 = src, planes 1..S = samples); no slice copies needed.
        nodes[l - 1] = jnp.concatenate([nodes[l], adj[nodes[l]].T.reshape(-1)], axis=0)
        if l - 1 >= 1:
            tms[l - 1] = _choose_tm(nodes[l - 1].shape[0])

    # ---- bottom-up: propagate features level by level ----
    h = node_feats_bf16[nodes[0]]                        # [(1+S)*M1, D] level-0 gather (XLA)
    for l in range(1, n_layers + 1):
        Ml = nodes[l].shape[0]
        x = h.reshape(1 + S, Ml, h.shape[-1])            # layout-preserving reshape
        if l == 1:
            w_s, w_n, b = params["w0_src"], params["w0_ngh"], params["b0"]
        else:
            w_s, w_n, b = params["wh_src"], params["wh_ngh"], params["bh"]  # shared Linear
        if l == n_layers:
            h = sage_layer(x, w_s, w_n, b, relu=False, tm=tms[l],
                           proj=(params["w_out"], params["b_out"]))
        else:
            h = sage_layer(x, w_s, w_n, b, relu=True, tm=tms[l])
    return h[:B]


# ---------------------------------------------------------------------------
# Main
# ---------------------------------------------------------------------------

if __name__ == "__main__":
    in_dim, hidden, out_dim, n_layers, samples = 32, 32, 16, 2, 8
    num_nodes, batch_size = 64, 8

    key = jax.random.PRNGKey(0)
    k_x, k_adj, k_w0, k_b0, k_wh, k_bh, k_wo, k_bo, k_batch = jax.random.split(key, 9)

    # Synthetic graph: node features + fixed-fanout sampled adjacency.
    node_feats = jax.random.normal(k_x, (num_nodes, in_dim), dtype=jnp.float32)
    adj = jax.random.randint(k_adj, (num_nodes, samples), 0, num_nodes, dtype=jnp.int32)
    batch = jax.random.permutation(k_batch, num_nodes)[:batch_size].astype(jnp.int32)

    # nn.Linear-style init.
    def lin_init(kw, kb, fan_in, fan_out):
        bound = 1.0 / jnp.sqrt(fan_in)
        w = jax.random.uniform(kw, (fan_in, fan_out), jnp.float32, -bound, bound)
        b = jax.random.uniform(kb, (fan_out,), jnp.float32, -bound, bound)
        return w, b

    w0, b0 = lin_init(k_w0, k_b0, in_dim * 2, hidden)        # layers[0]: Linear(in*2, hidden)
    w_hid, b_hid = lin_init(k_wh, k_bh, hidden * 2, hidden)  # shared Linear(hidden*2, hidden)
    w_out, b_out = lin_init(k_wo, k_bo, hidden, out_dim)     # proj_out: Linear(hidden, out)

    # bf16 MXU operands (weights split into src / neighbor halves); f32 biases.
    bf = jnp.bfloat16
    params = dict(
        w0_src=w0[:in_dim].astype(bf), w0_ngh=w0[in_dim:].astype(bf),
        b0=b0.reshape(1, hidden),
        wh_src=w_hid[:hidden].astype(bf), wh_ngh=w_hid[hidden:].astype(bf),
        bh=b_hid.reshape(1, hidden),
        w_out=w_out.astype(bf), b_out=b_out.reshape(1, out_dim),
    )
    node_feats_bf16 = node_feats.astype(bf)

    fwd = jax.jit(functools.partial(graphsage_forward, n_layers=n_layers))
    result = jax.block_until_ready(fwd(params, node_feats_bf16, adj, batch))
    assert result.shape == (batch_size, out_dim), result.shape
    assert result.dtype == jnp.float32

    # Pure-JAX reference of the same forward (original recursion, identical bf16-operand /
    # f32-accumulate numerics).
    def ref_forward(nodes_, layer):
        if layer == 0:
            return node_feats_bf16[nodes_]
        src = ref_forward(nodes_, layer - 1)
        nb = adj[nodes_]
        M, S_ = nb.shape
        neigh_x = ref_forward(nb.reshape(-1), layer - 1).reshape(M, S_, -1)
        neigh = jnp.max(neigh_x, axis=1)
        if layer == 1:
            ws, wn, bb = params["w0_src"], params["w0_ngh"], b0
        else:
            ws, wn, bb = params["wh_src"], params["wh_ngh"], b_hid
        o = (jnp.dot(src, ws, preferred_element_type=jnp.float32)
             + jnp.dot(neigh, wn, preferred_element_type=jnp.float32) + bb)
        if layer == n_layers:
            return (jnp.dot(o.astype(bf), params["w_out"],
                            preferred_element_type=jnp.float32) + b_out)
        return jnp.maximum(o, 0.0).astype(bf)

    ref = ref_forward(batch, n_layers)
    max_err = float(jnp.max(jnp.abs(result - ref)))
    assert jnp.allclose(result, ref, atol=5e-3, rtol=5e-3), max_err

    print("KERNEL_OK")
</pallas_src>

<mosaic_0001>
module attributes {stable_mosaic.version = 11 : i64} {
  func.func @_sage_layer_kernel(%arg0: i32, %arg1: memref<9x24x32xbf16, #tpu.memory_space<vmem>>, %arg2: memref<32x32xbf16, #tpu.memory_space<vmem>>, %arg3: memref<32x32xbf16, #tpu.memory_space<vmem>>, %arg4: memref<1x32xf32, #tpu.memory_space<vmem>>, %arg5: memref<24x32xbf16, #tpu.memory_space<vmem>>) attributes {dimension_semantics = [#tpu.dimension_semantics<parallel>], iteration_bounds = array<i64: 3>, scalar_prefetch = 0 : i64, scratch_operands = 0 : i64, tpu.core_type = #tpu.core_type<tc>, window_params = [{transform_indices = @transform_0, window_bounds = array<i64: 9, 24, 32>}, {pipeline_mode = #tpu.pipeline_mode<synchronous>, transform_indices = @transform_1, window_bounds = array<i64: 32, 32>}, {pipeline_mode = #tpu.pipeline_mode<synchronous>, transform_indices = @transform_2, window_bounds = array<i64: 32, 32>}, {pipeline_mode = #tpu.pipeline_mode<synchronous>, transform_indices = @transform_3, window_bounds = array<i64: 1, 32>}, {transform_indices = @transform_4, window_bounds = array<i64: 24, 32>}]} {
    %c1 = arith.constant 1 : index
    %c0 = arith.constant 0 : index
    %c0_0 = arith.constant 0 : index
    %0 = vector.load %arg1[%c1, %c0, %c0_0] : memref<9x24x32xbf16, #tpu.memory_space<vmem>>, vector<1x24x32xbf16>
    %1 = vector.shape_cast %0 : vector<1x24x32xbf16> to vector<24x32xbf16>
    %c2 = arith.constant 2 : index
    %c0_1 = arith.constant 0 : index
    %c0_2 = arith.constant 0 : index
    %2 = vector.load %arg1[%c2, %c0_1, %c0_2] : memref<9x24x32xbf16, #tpu.memory_space<vmem>>, vector<1x24x32xbf16>
    %3 = vector.shape_cast %2 : vector<1x24x32xbf16> to vector<24x32xbf16>
    %4 = arith.maximumf %1, %3 : vector<24x32xbf16>
    %c3 = arith.constant 3 : index
    %c0_3 = arith.constant 0 : index
    %c0_4 = arith.constant 0 : index
    %5 = vector.load %arg1[%c3, %c0_3, %c0_4] : memref<9x24x32xbf16, #tpu.memory_space<vmem>>, vector<1x24x32xbf16>
    %6 = vector.shape_cast %5 : vector<1x24x32xbf16> to vector<24x32xbf16>
    %7 = arith.maximumf %4, %6 : vector<24x32xbf16>
    %c4 = arith.constant 4 : index
    %c0_5 = arith.constant 0 : index
    %c0_6 = arith.constant 0 : index
    %8 = vector.load %arg1[%c4, %c0_5, %c0_6] : memref<9x24x32xbf16, #tpu.memory_space<vmem>>, vector<1x24x32xbf16>
    %9 = vector.shape_cast %8 : vector<1x24x32xbf16> to vector<24x32xbf16>
    %10 = arith.maximumf %7, %9 : vector<24x32xbf16>
    %c5 = arith.constant 5 : index
    %c0_7 = arith.constant 0 : index
    %c0_8 = arith.constant 0 : index
    %11 = vector.load %arg1[%c5, %c0_7, %c0_8] : memref<9x24x32xbf16, #tpu.memory_space<vmem>>, vector<1x24x32xbf16>
    %12 = vector.shape_cast %11 : vector<1x24x32xbf16> to vector<24x32xbf16>
    %13 = arith.maximumf %10, %12 : vector<24x32xbf16>
    %c6 = arith.constant 6 : index
    %c0_9 = arith.constant 0 : index
    %c0_10 = arith.constant 0 : index
    %14 = vector.load %arg1[%c6, %c0_9, %c0_10] : memref<9x24x32xbf16, #tpu.memory_space<vmem>>, vector<1x24x32xbf16>
    %15 = vector.shape_cast %14 : vector<1x24x32xbf16> to vector<24x32xbf16>
    %16 = arith.maximumf %13, %15 : vector<24x32xbf16>
    %c7 = arith.constant 7 : index
    %c0_11 = arith.constant 0 : index
    %c0_12 = arith.constant 0 : index
    %17 = vector.load %arg1[%c7, %c0_11, %c0_12] : memref<9x24x32xbf16, #tpu.memory_space<vmem>>, vector<1x24x32xbf16>
    %18 = vector.shape_cast %17 : vector<1x24x32xbf16> to vector<24x32xbf16>
    %19 = arith.maximumf %16, %18 : vector<24x32xbf16>
    %c8 = arith.constant 8 : index
    %c0_13 = arith.constant 0 : index
    %c0_14 = arith.constant 0 : index
    %20 = vector.load %arg1[%c8, %c0_13, %c0_14] : memref<9x24x32xbf16, #tpu.memory_space<vmem>>, vector<1x24x32xbf16>
    %21 = vector.shape_cast %20 : vector<1x24x32xbf16> to vector<24x32xbf16>
    %22 = arith.maximumf %19, %21 : vector<24x32xbf16>
    %c0_15 = arith.constant 0 : index
    %c0_16 = arith.constant 0 : index
    %c0_17 = arith.constant 0 : index
    %23 = vector.load %arg1[%c0_15, %c0_16, %c0_17] : memref<9x24x32xbf16, #tpu.memory_space<vmem>>, vector<1x24x32xbf16>
    %24 = vector.shape_cast %23 : vector<1x24x32xbf16> to vector<24x32xbf16>
    %c0_18 = arith.constant 0 : index
    %c0_19 = arith.constant 0 : index
    %25 = vector.load %arg2[%c0_18, %c0_19] : memref<32x32xbf16, #tpu.memory_space<vmem>>, vector<32x32xbf16>
    %cst = arith.constant dense<0.000000e+00> : vector<24x32xf32>
    %26 = tpu.matmul %24, %25, %cst {dimension_numbers = #tpu.dot_dimension_numbers<[1], [0], [0], [1], [0, 0, 1, 1], [], []>} : vector<24x32xbf16>, vector<32x32xbf16>, vector<24x32xf32> -> vector<24x32xf32>
    %c0_20 = arith.constant 0 : index
    %c0_21 = arith.constant 0 : index
    %27 = vector.load %arg3[%c0_20, %c0_21] : memref<32x32xbf16, #tpu.memory_space<vmem>>, vector<32x32xbf16>
    %cst_22 = arith.constant dense<0.000000e+00> : vector<24x32xf32>
    %28 = tpu.matmul %22, %27, %cst_22 {dimension_numbers = #tpu.dot_dimension_numbers<[1], [0], [0], [1], [0, 0, 1, 1], [], []>} : vector<24x32xbf16>, vector<32x32xbf16>, vector<24x32xf32> -> vector<24x32xf32>
    %29 = arith.addf %26, %28 : vector<24x32xf32>
    %c0_23 = arith.constant 0 : index
    %c0_24 = arith.constant 0 : index
    %30 = vector.load %arg4[%c0_23, %c0_24] : memref<1x32xf32, #tpu.memory_space<vmem>>, vector<1x32xf32>
    %31 = vector.broadcast %30 : vector<1x32xf32> to vector<24x32xf32>
    %32 = arith.addf %29, %31 : vector<24x32xf32>
    %cst_25 = arith.constant 0.000000e+00 : f32
    %33 = vector.broadcast %cst_25 : f32 to vector<24x32xf32>
    %34 = arith.maximumf %32, %33 : vector<24x32xf32>
    %35 = arith.truncf %34 : vector<24x32xf32> to vector<24x32xbf16>
    %c0_26 = arith.constant 0 : index
    %c0_27 = arith.constant 0 : index
    %36 = vector.load %arg5[%c0_26, %c0_27] : memref<24x32xbf16, #tpu.memory_space<vmem>>, vector<24x32xbf16>
    tpu.vector_store %arg5[%c0_26, %c0_27], %35 {strides = array<i32>} : memref<24x32xbf16, #tpu.memory_space<vmem>>, vector<24x32xbf16>,
    return
  }
  func.func @transform_0(%arg0: i32) -> (i32, i32, i32) {
    %c0_i32 = arith.constant 0 : i32
    %c0_i32_0 = arith.constant 0 : i32
    %c0_i32_1 = arith.constant 0 : i32
    return %c0_i32, %arg0, %c0_i32_0 : i32, i32, i32
  }
  func.func @transform_1(%arg0: i32) -> (i32, i32) {
    %c0_i32 = arith.constant 0 : i32
    %c0_i32_0 = arith.constant 0 : i32
    %c0_i32_1 = arith.constant 0 : i32
    return %c0_i32, %c0_i32_0 : i32, i32
  }
  func.func @transform_2(%arg0: i32) -> (i32, i32) {
    %c0_i32 = arith.constant 0 : i32
    %c0_i32_0 = arith.constant 0 : i32
    %c0_i32_1 = arith.constant 0 : i32
    return %c0_i32, %c0_i32_0 : i32, i32
  }
  func.func @transform_3(%arg0: i32) -> (i32, i32) {
    %c0_i32 = arith.constant 0 : i32
    %c0_i32_0 = arith.constant 0 : i32
    %c0_i32_1 = arith.constant 0 : i32
    return %c0_i32, %c0_i32_0 : i32, i32
  }
  func.func @transform_4(%arg0: i32) -> (i32, i32) {
    %c0_i32 = arith.constant 0 : i32
    %c0_i32_0 = arith.constant 0 : i32
    return %arg0, %c0_i32 : i32, i32
  }
}

module attributes {stable_mosaic.version = 11 : i64} {
  func.func @_sage_top_kernel(%arg0: i32, %arg1: memref<9x8x32xbf16, #tpu.memory_space<vmem>>, %arg2: memref<32x32xbf16, #tpu.memory_space<vmem>>, %arg3: memref<32x32xbf16, #tpu.memory_space<vmem>>, %arg4: memref<1x32xf32, #tpu.memory_space<vmem>>, %arg5: memref<32x16xbf16, #tpu.memory_space<vmem>>, %arg6: memref<1x16xf32, #tpu.memory_space<vmem>>, %arg7: memref<8x16xf32, #tpu.memory_space<vmem>>) attributes {dimension_semantics = [#tpu.dimension_semantics<parallel>], iteration_bounds = array<i64: 1>, scalar_prefetch = 0 : i64, scratch_operands = 0 : i64, tpu.core_type = #tpu.core_type<tc>, window_params = [{transform_indices = @transform_0, window_bounds = array<i64: 9, 8, 32>}, {pipeline_mode = #tpu.pipeline_mode<synchronous>, transform_indices = @transform_1, window_bounds = array<i64: 32, 32>}, {pipeline_mode = #tpu.pipeline_mode<synchronous>, transform_indices = @transform_2, window_bounds = array<i64: 32, 32>}, {pipeline_mode = #tpu.pipeline_mode<synchronous>, transform_indices = @transform_3, window_bounds = array<i64: 1, 32>}, {pipeline_mode = #tpu.pipeline_mode<synchronous>, transform_indices = @transform_4, window_bounds = array<i64: 32, 16>}, {pipeline_mode = #tpu.pipeline_mode<synchronous>, transform_indices = @transform_5, window_bounds = array<i64: 1, 16>}, {transform_indices = @transform_6, window_bounds = array<i64: 8, 16>}]} {
    %c1 = arith.constant 1 : index
    %c0 = arith.constant 0 : index
    %c0_0 = arith.constant 0 : index
    %0 = vector.load %arg1[%c1, %c0, %c0_0] : memref<9x8x32xbf16, #tpu.memory_space<vmem>>, vector<1x8x32xbf16>
    %1 = vector.shape_cast %0 : vector<1x8x32xbf16> to vector<8x32xbf16>
    %c2 = arith.constant 2 : index
    %c0_1 = arith.constant 0 : index
    %c0_2 = arith.constant 0 : index
    %2 = vector.load %arg1[%c2, %c0_1, %c0_2] : memref<9x8x32xbf16, #tpu.memory_space<vmem>>, vector<1x8x32xbf16>
    %3 = vector.shape_cast %2 : vector<1x8x32xbf16> to vector<8x32xbf16>
    %4 = arith.maximumf %1, %3 : vector<8x32xbf16>
    %c3 = arith.constant 3 : index
    %c0_3 = arith.constant 0 : index
    %c0_4 = arith.constant 0 : index
    %5 = vector.load %arg1[%c3, %c0_3, %c0_4] : memref<9x8x32xbf16, #tpu.memory_space<vmem>>, vector<1x8x32xbf16>
    %6 = vector.shape_cast %5 : vector<1x8x32xbf16> to vector<8x32xbf16>
    %7 = arith.maximumf %4, %6 : vector<8x32xbf16>
    %c4 = arith.constant 4 : index
    %c0_5 = arith.constant 0 : index
    %c0_6 = arith.constant 0 : index
    %8 = vector.load %arg1[%c4, %c0_5, %c0_6] : memref<9x8x32xbf16, #tpu.memory_space<vmem>>, vector<1x8x32xbf16>
    %9 = vector.shape_cast %8 : vector<1x8x32xbf16> to vector<8x32xbf16>
    %10 = arith.maximumf %7, %9 : vector<8x32xbf16>
    %c5 = arith.constant 5 : index
    %c0_7 = arith.constant 0 : index
    %c0_8 = arith.constant 0 : index
    %11 = vector.load %arg1[%c5, %c0_7, %c0_8] : memref<9x8x32xbf16, #tpu.memory_space<vmem>>, vector<1x8x32xbf16>
    %12 = vector.shape_cast %11 : vector<1x8x32xbf16> to vector<8x32xbf16>
    %13 = arith.maximumf %10, %12 : vector<8x32xbf16>
    %c6 = arith.constant 6 : index
    %c0_9 = arith.constant 0 : index
    %c0_10 = arith.constant 0 : index
    %14 = vector.load %arg1[%c6, %c0_9, %c0_10] : memref<9x8x32xbf16, #tpu.memory_space<vmem>>, vector<1x8x32xbf16>
    %15 = vector.shape_cast %14 : vector<1x8x32xbf16> to vector<8x32xbf16>
    %16 = arith.maximumf %13, %15 : vector<8x32xbf16>
    %c7 = arith.constant 7 : index
    %c0_11 = arith.constant 0 : index
    %c0_12 = arith.constant 0 : index
    %17 = vector.load %arg1[%c7, %c0_11, %c0_12] : memref<9x8x32xbf16, #tpu.memory_space<vmem>>, vector<1x8x32xbf16>
    %18 = vector.shape_cast %17 : vector<1x8x32xbf16> to vector<8x32xbf16>
    %19 = arith.maximumf %16, %18 : vector<8x32xbf16>
    %c8 = arith.constant 8 : index
    %c0_13 = arith.constant 0 : index
    %c0_14 = arith.constant 0 : index
    %20 = vector.load %arg1[%c8, %c0_13, %c0_14] : memref<9x8x32xbf16, #tpu.memory_space<vmem>>, vector<1x8x32xbf16>
    %21 = vector.shape_cast %20 : vector<1x8x32xbf16> to vector<8x32xbf16>
    %22 = arith.maximumf %19, %21 : vector<8x32xbf16>
    %c0_15 = arith.constant 0 : index
    %c0_16 = arith.constant 0 : index
    %c0_17 = arith.constant 0 : index
    %23 = vector.load %arg1[%c0_15, %c0_16, %c0_17] : memref<9x8x32xbf16, #tpu.memory_space<vmem>>, vector<1x8x32xbf16>
    %24 = vector.shape_cast %23 : vector<1x8x32xbf16> to vector<8x32xbf16>
    %c0_18 = arith.constant 0 : index
    %c0_19 = arith.constant 0 : index
    %25 = vector.load %arg2[%c0_18, %c0_19] : memref<32x32xbf16, #tpu.memory_space<vmem>>, vector<32x32xbf16>
    %cst = arith.constant dense<0.000000e+00> : vector<8x32xf32>
    %26 = tpu.matmul %24, %25, %cst {dimension_numbers = #tpu.dot_dimension_numbers<[1], [0], [0], [1], [0, 0, 1, 1], [], []>} : vector<8x32xbf16>, vector<32x32xbf16>, vector<8x32xf32> -> vector<8x32xf32>
    %c0_20 = arith.constant 0 : index
    %c0_21 = arith.constant 0 : index
    %27 = vector.load %arg3[%c0_20, %c0_21] : memref<32x32xbf16, #tpu.memory_space<vmem>>, vector<32x32xbf16>
    %cst_22 = arith.constant dense<0.000000e+00> : vector<8x32xf32>
    %28 = tpu.matmul %22, %27, %cst_22 {dimension_numbers = #tpu.dot_dimension_numbers<[1], [0], [0], [1], [0, 0, 1, 1], [], []>} : vector<8x32xbf16>, vector<32x32xbf16>, vector<8x32xf32> -> vector<8x32xf32>
    %29 = arith.addf %26, %28 : vector<8x32xf32>
    %c0_23 = arith.constant 0 : index
    %c0_24 = arith.constant 0 : index
    %30 = vector.load %arg4[%c0_23, %c0_24] : memref<1x32xf32, #tpu.memory_space<vmem>>, vector<1x32xf32>
    %31 = vector.broadcast %30 : vector<1x32xf32> to vector<8x32xf32>
    %32 = arith.addf %29, %31 : vector<8x32xf32>
    %33 = arith.truncf %32 : vector<8x32xf32> to vector<8x32xbf16>
    %c0_25 = arith.constant 0 : index
    %c0_26 = arith.constant 0 : index
    %34 = vector.load %arg5[%c0_25, %c0_26] : memref<32x16xbf16, #tpu.memory_space<vmem>>, vector<32x16xbf16>
    %cst_27 = arith.constant dense<0.000000e+00> : vector<8x16xf32>
    %35 = tpu.matmul %33, %34, %cst_27 {dimension_numbers = #tpu.dot_dimension_numbers<[1], [0], [0], [1], [0, 0, 1, 1], [], []>} : vector<8x32xbf16>, vector<32x16xbf16>, vector<8x16xf32> -> vector<8x16xf32>
    %c0_28 = arith.constant 0 : index
    %c0_29 = arith.constant 0 : index
    %36 = vector.load %arg6[%c0_28, %c0_29] : memref<1x16xf32, #tpu.memory_space<vmem>>, vector<1x16xf32>
    %37 = vector.broadcast %36 : vector<1x16xf32> to vector<8x16xf32>
    %38 = arith.addf %35, %37 : vector<8x16xf32>
    %c0_30 = arith.constant 0 : index
    %c0_31 = arith.constant 0 : index
    %39 = vector.load %arg7[%c0_30, %c0_31] : memref<8x16xf32, #tpu.memory_space<vmem>>, vector<8x16xf32>
    tpu.vector_store %arg7[%c0_30, %c0_31], %38 {strides = array<i32>} : memref<8x16xf32, #tpu.memory_space<vmem>>, vector<8x16xf32>,
    return
  }
  func.func @transform_0(%arg0: i32) -> (i32, i32, i32) {
    %c0_i32 = arith.constant 0 : i32
    %c0_i32_0 = arith.constant 0 : i32
    %c0_i32_1 = arith.constant 0 : i32
    return %c0_i32, %arg0, %c0_i32_0 : i32, i32, i32
  }
  func.func @transform_1(%arg0: i32) -> (i32, i32) {
    %c0_i32 = arith.constant 0 : i32
    %c0_i32_0 = arith.constant 0 : i32
    %c0_i32_1 = arith.constant 0 : i32
    return %c0_i32, %c0_i32_0 : i32, i32
  }
  func.func @transform_2(%arg0: i32) -> (i32, i32) {
    %c0_i32 = arith.constant 0 : i32
    %c0_i32_0 = arith.constant 0 : i32
    %c0_i32_1 = arith.constant 0 : i32
    return %c0_i32, %c0_i32_0 : i32, i32
  }
  func.func @transform_3(%arg0: i32) -> (i32, i32) {
    %c0_i32 = arith.constant 0 : i32
    %c0_i32_0 = arith.constant 0 : i32
    %c0_i32_1 = arith.constant 0 : i32
    return %c0_i32, %c0_i32_0 : i32, i32
  }
  func.func @transform_4(%arg0: i32) -> (i32, i32) {
    %c0_i32 = arith.constant 0 : i32
    %c0_i32_0 = arith.constant 0 : i32
    %c0_i32_1 = arith.constant 0 : i32
    return %c0_i32, %c0_i32_0 : i32, i32
  }
  func.func @transform_5(%arg0: i32) -> (i32, i32) {
    %c0_i32 = arith.constant 0 : i32
    %c0_i32_0 = arith.constant 0 : i32
    %c0_i32_1 = arith.constant 0 : i32
    return %c0_i32, %c0_i32_0 : i32, i32
  }
  func.func @transform_6(%arg0: i32) -> (i32, i32) {
    %c0_i32 = arith.constant 0 : i32
    %c0_i32_0 = arith.constant 0 : i32
    return %arg0, %c0_i32 : i32, i32
  }
}

</mosaic_0001>

<bundles_post_ra>
// kernel: graphsage_forward.2
= control target key start
LH: loop header
LB: loop body
LE: loop exit
PB: predicated region body
PF: predicated region fallthrough
CT: control target
= control target key end

     0   :  { %s818_s15 = smov 0   ;;  %s820_s16 = smov 0   ;;  %s948_s0 = inlined_call_operand.vmem [shape: bf16[9,72,32], index: 0, kind: input, shape index: {}]   ;;  %s949_s1 = inlined_call_operand.vmem [shape: bf16[32,32], index: 1, kind: input, shape index: {}]   ;;  %s950_s2 = inlined_call_operand.vmem [shape: bf16[32,32], index: 2, kind: input, shape index: {}]   ;;  %s951_s3 = inlined_call_operand.vmem [shape: f32[1,32], index: 3, kind: input, shape index: {}]   ;;  %s952_s4 = inlined_call_operand.vmem [shape: bf16[72,32], index: 4, kind: output, shape index: {}]  }
   0x1   :  { %s822_s17 = smov 0  }
   0x2 LB: > { %s635_s18 = sadd.s32 4294967295, %s791_s17   ;;  %s835_s19 = sadd.s32 1, %s791_s17   ;;  %s791_s17 = sphi %s822_s17, %s955_s17   ;;  %s787_s16 = sphi %s820_s16, %s954_s16   ;;  %s783_s15 = sphi %s818_s15, %s953_s15  }
   0x3   : > { %s18_s20 = ssub.s32 %s791_s17, %s835_s19  ;;  %s21_s21 = sadd.s32 1, %s787_s16 }
   0x4   : > { %p19_p0 = scmp.eq.s32.totalorder %s18_s20, 0  ;;  %p28_p1 = scmp.ne.s32.totalorder %s787_s16, %s783_s15 }
   0x5   : > { %p29_p2 = scmp.eq.s32.totalorder %s791_s17, 0  ;;  %p638_p4 = scmp.ge.s32.totalorder %s791_s17, 3 }
   0x6   : > { %s844_s22 = scalar_select %p19_p0, %s787_s16, %s21_s21  }
   0x7   : > { %p30_p3 = por %p29_p2, %p28_p1  ;;  %152 = sbr.rel (%p638_p4) target bundleno = 35 (0x23), region = 28 }
   0xc   : > { %155 = sbr.rel (!%p30_p3) target bundleno = 35 (0x23), region = 32  ;;  %s157_s23 = sand.u32 (%p30_p3), 1, %s787_s16  }
   0xd   : > { %s692_s24 = smul.u32 (%p30_p3), 12, %s791_s17 }
   0xe   : > { %s742_s25 = smul.u32 (%p30_p3), 108, %s157_s23 }
   0xf   : > { %s852_s28 = scalar_lea.vmem (%p30_p3), %s948_s0, %s692_s24 }
  0x10   : > { %v179_v0 = vld [vmem:[%s852_s28] sm:$0xff] (%p30_p3)   ;;  %v183_v1 = vld [vmem:[%s852_s28 + $0x8] sm:$0xf] (%p30_p3)  ;;  %s857_s29 = scalar_lea.vmem (%p30_p3), [#allocation2], %s742_s25  ;;  %v189_v3 = vld [vmem:[%s852_s28 + $0x2c] sm:$0xf] (%p30_p3) }
  0x11   : > { %v185_v2 = vld [vmem:[%s852_s28 + $0x24] sm:$0xff]   ;;  %180 = vst [vmem:[%s857_s29] sm:$0xff] %v179_v0   ;;  %v195_v5 = vld [vmem:[%s852_s28 + $0x50] sm:$0xf]  ;;  %v201_v7 = vld [vmem:[%s852_s28 + $0x74] sm:$0xf] }
  0x12   : > { %184 = vst [vmem:[%s857_s29 + $0x8] sm:$0xf] %v183_v1  ;;  %v191_v4 = vld [vmem:[%s852_s28 + $0x48] sm:$0xff]   ;;  %v203_v8 = vld [vmem:[%s852_s28 + $0x90] sm:$0xff]   ;;  %v207_v9 = vld [vmem:[%s852_s28 + $0x98] sm:$0xf] }
  0x13   : > { %186 = vst [vmem:[%s857_s29 + $0xc] sm:$0xff] %v185_v2   ;;  %v197_v6 = vld [vmem:[%s852_s28 + $0x6c] sm:$0xff]   ;;  %v209_v10 = vld [vmem:[%s852_s28 + $0xb4] sm:$0xff]   ;;  %v213_v11 = vld [vmem:[%s852_s28 + $0xbc] sm:$0xf] }
  0x14   : > { %190 = vst [vmem:[%s857_s29 + $0x14] sm:$0xf] %v189_v3  ;;  %v215_v12 = vld [vmem:[%s852_s28 + $0xd8] sm:$0xff]   ;;  %v219_v13 = vld [vmem:[%s852_s28 + $0xe0] sm:$0xf] }
  0x15   : > { %192 = vst [vmem:[%s857_s29 + $0x18] sm:$0xff] %v191_v4   ;;  %v221_v14 = vld [vmem:[%s852_s28 + $0xfc] sm:$0xff]   ;;  %v225_v15 = vld [vmem:[%s852_s28 + $0x104] sm:$0xf]  ;;  %v231_v17 = vld [vmem:[%s852_s28 + $0x128] sm:$0xf] }
  0x16   : > { %196 = vst [vmem:[%s857_s29 + $0x20] sm:$0xf] %v195_v5  ;;  %v227_v16 = vld [vmem:[%s852_s28 + $0x120] sm:$0xff]  }
  0x17   : > { %198 = vst [vmem:[%s857_s29 + $0x24] sm:$0xff] %v197_v6  }
  0x18   : > { %202 = vst [vmem:[%s857_s29 + $0x2c] sm:$0xf] %v201_v7 }
  0x19   : > { %204 = vst [vmem:[%s857_s29 + $0x30] sm:$0xff] %v203_v8  }
  0x1a   : > { %208 = vst [vmem:[%s857_s29 + $0x38] sm:$0xf] %v207_v9 }
  0x1b   : > { %210 = vst [vmem:[%s857_s29 + $0x3c] sm:$0xff] %v209_v10  }
  0x1c   : > { %214 = vst [vmem:[%s857_s29 + $0x44] sm:$0xf] %v213_v11 }
  0x1d   : > { %216 = vst [vmem:[%s857_s29 + $0x48] sm:$0xff] %v215_v12  }
  0x1e   : > { %220 = vst [vmem:[%s857_s29 + $0x50] sm:$0xf] %v219_v13 }
  0x1f   : > { %222 = vst [vmem:[%s857_s29 + $0x54] sm:$0xff] %v221_v14  }
  0x20   : > { %226 = vst [vmem:[%s857_s29 + $0x5c] sm:$0xf] %v225_v15 }
  0x21   : > { %228 = vst [vmem:[%s857_s29 + $0x60] sm:$0xff] %v227_v16  }
  0x22   : > { %232 = vst [vmem:[%s857_s29 + $0x68] sm:$0xf] %v231_v17 }
  0x23 PF: > { %p640_p5 = scmp.ge.s32.totalorder %s791_s17, 1  ;;  %p309_p6 = scmp.lt.s32.totalorder %s791_s17, 4 }
  0x25   : > { %p310_p7 = pnand %p640_p5, %p309_p6 }
  0x26   : > { %s316_s6 = sand.u32 (!%p310_p7), 1, %s783_s15   ;;  %s342_s15 = smul.u32 (!%p310_p7), 3, %s635_s18 }
  0x27   : > { %313 = sbr.rel (%p310_p7) target bundleno = 210 (0xd2), region = 73 }
  0x28   : > { %s743_s9 = smul.u32 (!%p310_p7), 108, %s316_s6  ;;  %p343_p8 = scmp.lt.s32.totalorder (!%p310_p7), %s342_s15, 8 }
  0x2a   : > { %s907_s14 = scalar_lea.vmem (!%p310_p7), [#allocation2], %s743_s9 }
  0x2c   : > { %v695_v18 = vld [vmem:[%s949_s1 + $0x8] sm:$0xff]  ;;  %v694_v20 = vld [vmem:[%s949_s1] sm:$0xff]  ;;  %vm487_vm0 = vcmask 261120   ;;  %s957_s15 = smov (!%p343_p8, %s342_s15), 8  ;;  %vm569_vm1 = vcmask 257024  }
  0x2d   : > { %v697_v19 = vld [vmem:[%s950_s2 + $0x8] sm:$0xff]  ;;  %544 = vmatpush.bf16.msra.mxu1 %v695_v18  ;;  %740 = vmatpush.bf16.msra.mxu3 %v695_v18  ;;  %v696_v21 = vld [vmem:[%s950_s2] sm:$0xff]  ;;  %s641_s23 = sshll.u32 %s957_s15, 2 }
  0x2e   : > { %500 = vmatpush.bf16.msra.mxu0 %v697_v19  ;;  %738 = vmatpush.bf16.msra.mxu2 %v697_v19  ;;  %v693_v22 = vld [vmem:[%s907_s14] sm:$0xff]  ;;  %v466_v23 = vld [vmem:[%s907_s14 + $0x8] sm:$0xff]   ;;  %v730_v24 = vld [vmem:[%s907_s14 + $0x10] sm:$0xff]   ;;  %s346_s26 = scalar_lea.vmem %s952_s4, %s641_s23 }
  0x2f   : > { %v517_v25 = vunpack.c.l.b16 %v466_v23  ;;  %v700_v26 = vunpack.c.l.bf16 %v730_v24  ;;  %v731_v27 = vld [vmem:[%s907_s14 + $0x18] sm:$0xff]   ;;  %v357_v28 = vunpack.c.h.bf16 %v466_v23  ;;  %v648_v29 = vld [vmem:[%s907_s14 + $0x20] sm:$0xff]   ;;  %v732_v30 = vld [vmem:[%s907_s14 + $0x28] sm:$0xff]   ;;  %v701_v38 = vunpack.c.h.bf16 %v730_v24 }
  0x30   : > { %v704_v31 = vunpack.c.l.bf16 %v731_v27  ;;  %v705_v32 = vunpack.c.h.bf16 %v731_v27  ;;  %v708_v33 = vunpack.c.l.bf16 %v732_v30  ;;  %v376_v34 = vunpack.c.h.bf16 %v648_v29  ;;  %v733_v35 = vld [vmem:[%s907_s14 + $0x30] sm:$0xff]   ;;  %v734_v36 = vld [vmem:[%s907_s14 + $0x40] sm:$0xff]   ;;  %v735_v43 = vld [vmem:[%s907_s14 + $0x48] sm:$0xff]  }
  0x31   : > { %545 = vmatpush.bf16.msra.mxu1 %v694_v20  ;;  %741 = vmatpush.bf16.msra.mxu3 %v694_v20  ;;  %v519_v37 = vpack.c.b16 %v517_v25, %v517_v25  ;;  %v712_v41 = vunpack.c.l.bf16 %v733_v35  ;;  %v713_v42 = vunpack.c.h.bf16 %v733_v35  ;;  %v654_v44 = vld [vmem:[%s907_s14 + $0x38] sm:$0xff]   ;;  %v716_v45 = vunpack.c.l.bf16 %v734_v36  ;;  %v660_v56 = vld [vmem:[%s907_s14 + $0x50] sm:$0xff]   ;;  %v737_v57 = vld [vmem:[%s907_s14 + $0x60] sm:$0xff]  }
  0x32   : > { %501 = vmatpush.bf16.msra.mxu0 %v696_v21  ;;  %739 = vmatpush.bf16.msra.mxu2 %v696_v21  ;;  %v363_v39 = vmax.f32 %v357_v28, %v704_v31  ;;  %v364_v40 = vmax.f32 %v700_v26, %v705_v32  ;;  %v408_v48 = vunpack.c.h.bf16 %v654_v44  ;;  %v736_v49 = vld [vmem:[%s907_s14 + $0x58] sm:$0xff]   ;;  %v362_v50 = vunpack.c.l.bf16 %v648_v29  ;;  %v665_v8 = vld [vmem:[%s907_s14 + $0x68] sm:$0xf]  ;;  %v768_v23 = vld [vmem:[%s951_s3] ss:$0 sm:$0xff] }
  0x33   : > { %v720_v51 = vunpack.c.l.bf16 %v735_v43  ;;  %v721_v52 = vunpack.c.h.bf16 %v735_v43  ;;  %v709_v53 = vunpack.c.h.bf16 %v732_v30  ;;  %v394_v59 = vunpack.c.l.bf16 %v654_v44 }
  0x34   : > { %688 = vmatmul.msk.bf16.vlgmr.msra.gmra.mxu1 %vm487_vm0, %v693_v22  ;;  %689 = vmatmul.msk.bf16.vlgmr.msra.gmra.mxu3 %vm487_vm0, %v519_v37  ;;  %v379_v46 = vmax.f32 %v363_v39, %v376_v34  ;;  %v380_v47 = vmax.f32 %v364_v40, %v708_v33  ;;  %v365_v58 = vmax.f32 %v701_v38, %v362_v50  ;;  %v724_v60 = vunpack.c.l.bf16 %v736_v49 }
  0x35   : > { %v440_v61 = vunpack.c.h.bf16 %v660_v56  ;;  %v717_v1 = vunpack.c.h.bf16 %v734_v36  ;;  %v728_v2 = vunpack.c.l.bf16 %v737_v57  ;;  %v729_v3 = vunpack.c.h.bf16 %v737_v57 }
  0x36   : > { %v395_v54 = vmax.f32 %v379_v46, %v712_v41  ;;  %v396_v55 = vmax.f32 %v380_v47, %v713_v42  ;;  %v381_v0 = vmax.f32 %v365_v58, %v709_v53  ;;  %v426_v7 = vunpack.c.l.bf16 %v660_v56 }
  0x37   : > { %v725_v12 = vunpack.c.h.bf16 %v736_v49  ;;  %v458_v16 = vunpack.c.l.bf16 %v665_v8 }
  0x38   : > { %v411_v62 = vmax.f32 %v395_v54, %v408_v48  ;;  %v412_v63 = vmax.f32 %v396_v55, %v716_v45  ;;  %v397_v6 = vmax.f32 %v381_v0, %v394_v59 }
  0x3a   : > { %v427_v4 = vmax.f32 %v411_v62, %v720_v51  ;;  %v428_v5 = vmax.f32 %v412_v63, %v721_v52  ;;  %v413_v11 = vmax.f32 %v397_v6, %v717_v1 }
  0x3c   : > { %v443_v9 = vmax.f32 %v427_v4, %v440_v61  ;;  %v444_v10 = vmax.f32 %v428_v5, %v724_v60  ;;  %v429_v15 = vmax.f32 %v413_v11, %v426_v7 }
  0x3e   : > { %v459_v13 = vmax.f32 %v443_v9, %v728_v2  ;;  %v460_v14 = vmax.f32 %v444_v10, %v729_v3  ;;  %v445_v18 = vmax.f32 %v429_v15, %v725_v12 }
  0x40   : > { %v462_v17 = vpack.c.bf16 %v460_v14, %v459_v13  ;;  %v461_v19 = vmax.f32 %v445_v18, %v458_v16 }
  0x42   : > { %674 = vmatmul.msk.bf16.vlgmr.msra.gmra.mxu0 %vm487_vm0, %v462_v17  ;;  %v463_v20 = vpack.c.bf16 %v461_v19, %v461_v19 }
  0x44   : > { %675 = vmatmul.msk.bf16.vlgmr.msra.gmra.mxu2 %vm487_vm0, %v463_v20 }
  0xb1   : > { %v547_v22 = vpop.f32.mrf.mxu1 }
  0xb7   : > { %v552_v21 = vpop.f32.mrf.mxu3 }
  0xb9   : > { %v549_v30 = vpop.f32.mrf.mxu1 }
  0xbf   : > { %v554_v24 = vpop.f32.mrf.mxu3  ;;  %v503_v25 = vpop.f32.mrf.mxu0 }
  0xc0   : > { %v548_v26 = vadd.f32 %v547_v22, %v503_v25 }
  0xc2   : > { %v560_v27 = vadd.f32 %v768_v23, %v548_v26 }
  0xc4   : > { %v563_v28 = vmax.f32 %v560_v27, 0.0 }
  0xc6   : > { %v566_v29 = vpack.c.bf16 %v563_v28, %v563_v28 }
  0xc7   : > { %v505_v31 = vpop.f32.mrf.mxu0  ;;  %v508_v33 = vpop.f32.mrf.mxu2 }
  0xc8   : > { %570 = vst.msk [vmem:[%s346_s26] sm:$0xf] %vm569_vm1, %v566_v29  ;;  %v550_v32 = vadd.f32 %v549_v30, %v505_v31  ;;  %v553_v34 = vadd.f32 %v552_v21, %v508_v33 }
  0xca   : > { %v561_v35 = vadd.f32 %v768_v23, %v550_v32  ;;  %v562_v36 = vadd.f32 %v768_v23, %v553_v34 }
  0xcc   : > { %v564_v37 = vmax.f32 %v561_v35, 0.0  ;;  %v565_v38 = vmax.f32 %v562_v36, 0.0 }
  0xce   : > { %v567_v39 = vpack.c.bf16 %v564_v37, %v564_v37  ;;  %v568_v40 = vpack.c.bf16 %v565_v38, %v565_v38 }
  0xcf   : > { %v510_v41 = vpop.f32.mrf.mxu2 }
  0xd0   : > { %571 = vst.msk [vmem:[%s346_s26 + $0x4] sm:$0xf] %vm569_vm1, %v567_v39 }
  0xd1   : > { %572 = vst.msk [vmem:[%s346_s26 + $0x8] sm:$0xf] %vm569_vm1, %v568_v40 }
  0xd2 PF: > { %p11_p9 = scmp.ge.s32.totalorder %s835_s19, 5   ;;  %s953_s15 = smov %s787_s16 }
  0xd3   : > { %s954_s16 = smov %s844_s22  ;;  %s955_s17 = smov %s835_s19 }
  0xd4   :  { %13 = sbr.rel (!%p11_p9) target bundleno = 2 (0x2), region = 120 }

// kernel: graphsage_forward.3
= control target key start
LH: loop header
LB: loop body
LE: loop exit
PB: predicated region body
PF: predicated region fallthrough
CT: control target
= control target key end

     0   :  { %s364_s0 = inlined_call_operand.vmem [shape: bf16[9,8,32], index: 0, kind: input, shape index: {}]   ;;  %s365_s1 = inlined_call_operand.vmem [shape: bf16[32,32], index: 1, kind: input, shape index: {}]   ;;  %s366_s2 = inlined_call_operand.vmem [shape: bf16[32,32], index: 2, kind: input, shape index: {}]   ;;  %s367_s3 = inlined_call_operand.vmem [shape: f32[1,32], index: 3, kind: input, shape index: {}]   ;;  %s368_s4 = inlined_call_operand.vmem [shape: bf16[32,16], index: 4, kind: input, shape index: {}]   ;;  %s369_s5 = inlined_call_operand.vmem [shape: f32[1,16], index: 5, kind: input, shape index: {}]   ;;  %s370_s6 = inlined_call_operand.hbm [shape: f32[8,16], index: 6, kind: output, shape index: {}]  }
   0x1   :  { %v231_v0 = vld [vmem:[%s365_s1 + $0x8] sm:$0xff]  ;;  %v195_v2 = vld [vmem:[%s364_s0 + $0x4] sm:$0xf]  ;;  %v249_v6 = vld [vmem:[%s364_s0 + $0x10] sm:$0xff]  }
   0x2   :  { %v233_v1 = vld [vmem:[%s366_s2 + $0x8] sm:$0xff]  ;;  %128 = vmatpush.bf16.msra.mxu1 %v231_v0  ;;  %v230_v3 = vld [vmem:[%s365_s1] sm:$0xff]  ;;  %v29_v5 = vunpack.c.l.bf16 %v195_v2 }
   0x3   :  { %v248_v4 = vld [vmem:[%s364_s0 + $0x8] sm:$0xff]   ;;  %100 = vmatpush.bf16.msra.mxu0 %v233_v1  ;;  %v232_v7 = vld [vmem:[%s366_s2] sm:$0xff] }
   0x4   :  { %v238_v8 = vunpack.c.l.bf16 %v248_v4  ;;  %v239_v9 = vunpack.c.h.bf16 %v248_v4 }
   0x5   :  { %11 = vsyncpa [#allocation3], 0  ;;  %v242_v11 = vunpack.c.l.bf16 %v249_v6  ;;  %v69_v12 = vld [vmem:[%s364_s0] sm:$0xf]  ;;  %vm90_vm0 = vcmask 261120   ;;  %v250_v13 = vld [vmem:[%s364_s0 + $0x18] sm:$0xff]   ;;  %v243_v15 = vunpack.c.h.bf16 %v249_v6 }
   0x6   :  { %v31_v10 = vmax.f32 %v29_v5, %v238_v8  ;;  %129 = vmatpush.bf16.msra.mxu1 %v230_v3  ;;  %v246_v17 = vunpack.c.l.bf16 %v250_v13  ;;  %v202_v18 = vld [vmem:[%s364_s0 + $0x20] sm:$0xf]  ;;  %v247_v20 = vunpack.c.h.bf16 %v250_v13  ;;  %v235_v26 = vld [vmem:[%s368_s4 + $0x8] sm:$0xff]  ;;  %s280_s22 = smov [#allocation2]   ;;  %s186_s25 = sshll.u32 %s370_s6, 4  ;;  %vm177_vm1 = vcmask 130048   ;;  %s187_s25 = int_to_ptr.hbm [resolvable:$true] %s186_s25 }
   0x7   :  { %101 = vmatpush.bf16.msra.mxu0 %v232_v7  ;;  %v66_v22 = vunpack.c.l.bf16 %v202_v18  ;;  %170 = vmatpush.bf16.msra.mxu2 %v235_v26  ;;  %v234_v27 = vld [vmem:[%s368_s4] sm:$0xff]  ;;  %s184_s4 = sshll.u32 %s280_s22, 4  ;;  %s185_s4 = int_to_ptr.vmem [resolvable:$true] %s184_s4 }
   0x8   :  { %v37_v14 = vmax.f32 %v31_v10, %v239_v9  ;;  %v252_v30 = vld [vmem:[%s367_s3] ss:$0 sm:$0xff] }
   0x9   :  { %220 = vmatmul.msk.bf16.vlgmr.msra.gmra.mxu1 %vm90_vm0, %v69_v12  ;;  %v253_v36 = vld [vmem:[%s369_s5] ss:$0 sm:$0xff] }
   0xa   :  { %v43_v16 = vmax.f32 %v37_v14, %v242_v11 }
   0xb   :  { %171 = vmatpush.bf16.msra.mxu2 %v234_v27 }
   0xc   :  { %v49_v19 = vmax.f32 %v43_v16, %v243_v15 }
   0xe   :  { %v55_v21 = vmax.f32 %v49_v19, %v246_v17 }
  0x10   :  { %v61_v23 = vmax.f32 %v55_v21, %v247_v20 }
  0x12   :  { %v67_v24 = vmax.f32 %v61_v23, %v66_v22 }
  0x14   :  { %v68_v25 = vpack.c.bf16 %v67_v24, %v67_v24 }
  0x16   :  { %211 = vmatmul.msk.bf16.vlgmr.msra.gmra.mxu0 %vm90_vm0, %v68_v25 }
  0x86   :  { %v131_v28 = vpop.f32.mrf.mxu1 }
  0x8e   :  { %v133_v29 = vpop.f32.mrf.mxu1 }
  0x93   :  { %v103_v31 = vpop.f32.mrf.mxu0 }
  0x94   :  { %v132_v32 = vadd.f32 %v131_v28, %v103_v31 }
  0x96   :  { %v139_v33 = vadd.f32 %v252_v30, %v132_v32 }
  0x98   :  { %v140_v34 = vpack.c.bf16 %v139_v33, %v139_v33 }
  0x9a   :  { %229 = vmatmul.msk.bf16.vlgmr.msra.gmra.mxu2 %vm90_vm0, %v140_v34 }
  0x9b   :  { %v105_v35 = vpop.f32.mrf.mxu0 }
 0x11d   :  { %v173_v37 = vpop.f32.mrf.mxu2 }
 0x11e   :  { %v174_v38 = vadd.f32 %v253_v36, %v173_v37 }
 0x120   :  { %178 = vst.msk [vmem:[#allocation2] sm:$0xff] %vm177_vm1, %v174_v38 }
 0x121   :  { %189 = dma.vmem_to_hbm [thread:$0]  %s185_s4, 128, %s187_s25, [#allocation3]  }
 0x125   :  { %v175_v39 = vpop.f32.mrf.mxu2 }
 0x126   :  { %278 = dma.done.wait [#allocation3], 128  }
 0x127   :  { %279 = vsyncadd [#allocation3], 4294967168 }
 0x128   :  { %194 = vsyncpa [#allocation3], 1 }

</bundles_post_ra>
